<compile_context>
chip_gen: v5e
topology: v5e:2x2
jax: 0.10.0
libtpu: 0.0.40
codegen_flags: <defaults>
</compile_context>

<pallas_src>
import numpy as np
import jax
import jax.numpy as jnp
from jax.experimental import pallas as pl
from jax.experimental.pallas import tpu as pltpu

ROT_SCALE = 0.2 / 180.0 * np.pi
TRANS_SCALE = 0.05

# The in-kernel 3-term Taylor forms for sin(a)/a and (1-cos a)/a^2 assume
# |angle| = |ROT_SCALE * tanh(.)| stays tiny; tie that assumption down so a
# future scale change cannot silently break the kernel's accuracy.
assert ROT_SCALE <= 0.01, (
    "_pose_kernel uses a truncated Taylor series that is only valid for "
    "ROT_SCALE << 1; rewrite with exact sin/cos if ROT_SCALE grows.")


def _pose_kernel(p_ref, out_ref):
    # p_ref: (6, Rb, 128) f32 in VMEM (rows 0-2 raw rot xyz, rows 3-5 raw trans xyz)
    # out_ref: (12, Rb, 128) f32 in VMEM (row-major 3x4 pose entries).
    # Single fused tanh over the packed slab (one EUP pass for rot + trans).
    t = jnp.tanh(p_ref[...])                              # (6, Rb, 128)

    rx = t[0] * ROT_SCALE                                 # (Rb, 128) dense vregs
    ry = t[1] * ROT_SCALE
    rz = t[2] * ROT_SCALE
    tx = t[3] * TRANS_SCALE
    ty = t[4] * TRANS_SCALE
    tz = t[5] * TRANS_SCALE

    # Hoisted shared products (each used 2-3 times below).
    xx = rx * rx
    yy = ry * ry
    zz = rz * rz
    xy = rx * ry
    xz = rx * rz
    yz = ry * rz

    # angle^2 <= 3 * ROT_SCALE^2 ~ 3.7e-5 -> Taylor series is exact in f32.
    sq = xx + yy + zz
    sq2 = sq * sq
    s = 1.0 - sq * (1.0 / 6.0) + sq2 * (1.0 / 120.0)      # sin(a)/a
    c = 0.5 - sq * (1.0 / 24.0) + sq2 * (1.0 / 720.0)     # (1-cos(a))/a^2

    sx = s * rx
    sy = s * ry
    sz = s * rz
    cxy = c * xy
    cxz = c * xz
    cyz = c * yz

    # Full-density (Rb,128) unmasked stores, one per pose entry.
    out_ref[0] = 1.0 - c * (yy + zz)     # r00
    out_ref[1] = cxy - sz                # r01
    out_ref[2] = cxz + sy                # r02
    out_ref[3] = tx
    out_ref[4] = cxy + sz                # r10
    out_ref[5] = 1.0 - c * (xx + zz)     # r11
    out_ref[6] = cyz - sx                # r12
    out_ref[7] = ty
    out_ref[8] = cxz - sy                # r20
    out_ref[9] = cyz + sx                # r21
    out_ref[10] = 1.0 - c * (xx + yy)    # r22
    out_ref[11] = tz


def _round_up(x, m):
    return (x + m - 1) // m * m


def pose_kernel_call(rotations, translations, max_block_rows=256):
    """rotations, translations: (N, 3) f32 -> (N, 4, 4) f32 poses."""
    n = rotations.shape[0]

    # Frame axis split into rows of 128 lanes.
    r_total = max(1, _round_up(n, 128) // 128)
    if r_total < 16:
        # Small N: one block covering the whole (padded) array; a full-extent
        # block dim is exempt from the (8,128) divisibility rule.
        rb = r_total
    else:
        # Large N: blocks are multiples of 8 sublane rows, capped at
        # max_block_rows (256 rows = 32768 frames, ~4.7 MiB double-buffered
        # in+out) and chosen so the grid has >= 2 parallel steps (v7x megacore).
        rb = min(max_block_rows, _round_up((r_total + 1) // 2, 8))
    r_pad = _round_up(r_total, rb)
    n_pad = r_pad * 128

    # Pack rot + trans into one (6, R, 128) slab -> single input DMA, single tanh.
    packed = jnp.concatenate(
        [rotations.astype(jnp.float32).T, translations.astype(jnp.float32).T],
        axis=0)                                            # (6, n)
    packed = jnp.pad(packed, ((0, 0), (0, n_pad - n))).reshape(6, r_pad, 128)

    out = pl.pallas_call(
        _pose_kernel,
        out_shape=jax.ShapeDtypeStruct((12, r_pad, 128), jnp.float32),
        grid=(r_pad // rb,),
        in_specs=[pl.BlockSpec((6, rb, 128), lambda i: (0, i, 0))],
        out_specs=pl.BlockSpec((12, rb, 128), lambda i: (0, i, 0)),
        compiler_params=pltpu.CompilerParams(
            dimension_semantics=("parallel",)),
    )(packed)

    # (12, R, 128) -> (n, 12) -> (n, 3, 4); append the constant homogeneous row
    # (convert3x4_4x4) here so it never costs kernel HBM write bandwidth.
    # TODO(synk): for large N the transpose below is a separate memory-bound XLA
    # op; in a real pipeline emit/consume the (12, R, 128) layout directly or
    # fuse pose construction into the downstream point-transform kernel.
    top = out.reshape(12, n_pad).T[:n].reshape(n, 3, 4)
    bottom = jnp.broadcast_to(
        jnp.array([[0.0, 0.0, 0.0, 1.0]], jnp.float32), (n, 1, 4))
    return jnp.concatenate([top, bottom], axis=1)          # (n, 4, 4)


class PoseModelv3:
    """JAX/Pallas port of the PyTorch PoseModelv3 forward pass."""

    def __init__(self, num_frame, num_camera, key=None):
        # The PyTorch module initializes these to zeros (identity poses); we use
        # small deterministic random values so the kernel exercises a
        # non-trivial rotation path.
        if key is None:
            key = jax.random.PRNGKey(0)
        k1, k2, k3, k4 = jax.random.split(key, 4)
        self.rotations_ref = 0.1 * jax.random.normal(k1, (num_frame, 3), jnp.float32)
        self.rotations_cam = 0.1 * jax.random.normal(k2, (num_camera - 1, 3), jnp.float32)
        self.translations_ref = 0.1 * jax.random.normal(k3, (num_frame, 3), jnp.float32)
        self.translations_cam = 0.1 * jax.random.normal(k4, (num_camera - 1, 3), jnp.float32)

    def forward(self, frame_idx, camera_idx=None):
        # TODO(synk): the reference forward uses `self.rotations`/`self.translations`
        # whose composition from *_ref / *_cam is not defined in the given code;
        # we use the per-frame (ref) parameters, matching the frame_idx gather.
        rotations = self.rotations_ref
        translations = self.translations_ref
        if frame_idx is not None:
            rotations = rotations[frame_idx]
            translations = translations[frame_idx]
        # TODO(synk): register_hook(clean_nan) is a backward-pass gradient hook;
        # it has no effect on the forward computation and is not translated.
        # TODO(synk): at N=4-8 frames this standalone pallas_call is pure
        # launch/DMA overhead; in a real pipeline fuse pose construction into
        # the downstream point-transform kernel.
        return pose_kernel_call(rotations, translations)


def _reference_poses(rotations, translations):
    """Pure-JAX reference (Rodrigues with sin/cos) for a sanity check."""
    rot = jnp.tanh(rotations) * ROT_SCALE
    trans = jnp.tanh(translations) * TRANS_SCALE
    angle = jnp.linalg.norm(rot, axis=-1, keepdims=True)   # (N,1)
    safe = jnp.where(angle < 1e-6, 1.0, angle)
    axis = rot / safe
    ca = jnp.cos(angle)[..., None]
    sa = jnp.sin(angle)[..., None]
    x, y, z = axis[:, 0], axis[:, 1], axis[:, 2]
    zeros = jnp.zeros_like(x)
    K = jnp.stack([zeros, -z, y, z, zeros, -x, -y, x, zeros], axis=-1).reshape(-1, 3, 3)
    I = jnp.eye(3, dtype=jnp.float32)[None]
    R = I + sa * K + (1.0 - ca) * (K @ K)
    R = jnp.where(angle[..., None] < 1e-6, I, R)
    top = jnp.concatenate([R, trans[:, :, None]], axis=2)          # (N,3,4)
    bottom = jnp.tile(jnp.array([[[0., 0., 0., 1.]]], jnp.float32), (rot.shape[0], 1, 1))
    return jnp.concatenate([top, bottom], axis=1)                   # (N,4,4)


if __name__ == "__main__":
    num_frame, num_camera = 8, 3
    model = PoseModelv3(num_frame=num_frame, num_camera=num_camera,
                        key=jax.random.PRNGKey(0))

    # Realistic module-sized call: 4 frames gathered out of 8.
    frame_idx = jnp.array([0, 2, 5, 7], dtype=jnp.int32)
    poses = model.forward(frame_idx, camera_idx=None)
    poses = jax.block_until_ready(poses)
    assert poses.shape == (4, 4, 4) and poses.dtype == jnp.float32

    ref = _reference_poses(model.rotations_ref[frame_idx],
                           model.translations_ref[frame_idx])
    np.testing.assert_allclose(np.asarray(poses), np.asarray(ref),
                               rtol=1e-5, atol=1e-6)

    # Second check: exercises the gridded (2 parallel blocks) + padded path
    # (N not a multiple of 128).
    kr, kt = jax.random.split(jax.random.PRNGKey(1))
    big_rot = 0.3 * jax.random.normal(kr, (2500, 3), jnp.float32)
    big_trn = 0.3 * jax.random.normal(kt, (2500, 3), jnp.float32)
    big = jax.block_until_ready(pose_kernel_call(big_rot, big_trn))
    assert big.shape == (2500, 4, 4)
    ref_big = _reference_poses(big_rot, big_trn)
    np.testing.assert_allclose(np.asarray(big), np.asarray(ref_big),
                               rtol=1e-5, atol=1e-6)

    print("KERNEL_OK")
</pallas_src>

<mosaic_0001>
module attributes {stable_mosaic.version = 11 : i64} {
  func.func @_pose_kernel(%arg0: i32, %arg1: memref<6x1x128xf32, #tpu.memory_space<vmem>>, %arg2: memref<12x1x128xf32, #tpu.memory_space<vmem>>) attributes {dimension_semantics = [#tpu.dimension_semantics<parallel>], iteration_bounds = array<i64: 1>, scalar_prefetch = 0 : i64, scratch_operands = 0 : i64, tpu.core_type = #tpu.core_type<tc>, window_params = [{transform_indices = @transform_0, window_bounds = array<i64: 6, 1, 128>}, {transform_indices = @transform_1, window_bounds = array<i64: 12, 1, 128>}]} {
    %c0 = arith.constant 0 : index
    %c0_0 = arith.constant 0 : index
    %c0_1 = arith.constant 0 : index
    %0 = vector.load %arg1[%c0, %c0_0, %c0_1] : memref<6x1x128xf32, #tpu.memory_space<vmem>>, vector<6x1x128xf32>
    %1 = math.tanh %0 : vector<6x1x128xf32>
    %2 = vector.extract_strided_slice %1 {offsets = [0, 0, 0], sizes = [1, 1, 128], strides = [1, 1, 1]} : vector<6x1x128xf32> to vector<1x1x128xf32>
    %3 = vector.shape_cast %2 : vector<1x1x128xf32> to vector<1x128xf32>
    %cst = arith.constant 0.00349065848 : f32
    %4 = vector.broadcast %cst : f32 to vector<1x128xf32>
    %5 = arith.mulf %3, %4 : vector<1x128xf32>
    %6 = vector.extract_strided_slice %1 {offsets = [1, 0, 0], sizes = [1, 1, 128], strides = [1, 1, 1]} : vector<6x1x128xf32> to vector<1x1x128xf32>
    %7 = vector.shape_cast %6 : vector<1x1x128xf32> to vector<1x128xf32>
    %cst_2 = arith.constant 0.00349065848 : f32
    %8 = vector.broadcast %cst_2 : f32 to vector<1x128xf32>
    %9 = arith.mulf %7, %8 : vector<1x128xf32>
    %10 = vector.extract_strided_slice %1 {offsets = [2, 0, 0], sizes = [1, 1, 128], strides = [1, 1, 1]} : vector<6x1x128xf32> to vector<1x1x128xf32>
    %11 = vector.shape_cast %10 : vector<1x1x128xf32> to vector<1x128xf32>
    %cst_3 = arith.constant 0.00349065848 : f32
    %12 = vector.broadcast %cst_3 : f32 to vector<1x128xf32>
    %13 = arith.mulf %11, %12 : vector<1x128xf32>
    %14 = vector.extract_strided_slice %1 {offsets = [3, 0, 0], sizes = [1, 1, 128], strides = [1, 1, 1]} : vector<6x1x128xf32> to vector<1x1x128xf32>
    %15 = vector.shape_cast %14 : vector<1x1x128xf32> to vector<1x128xf32>
    %cst_4 = arith.constant 5.000000e-02 : f32
    %16 = vector.broadcast %cst_4 : f32 to vector<1x128xf32>
    %17 = arith.mulf %15, %16 : vector<1x128xf32>
    %18 = vector.extract_strided_slice %1 {offsets = [4, 0, 0], sizes = [1, 1, 128], strides = [1, 1, 1]} : vector<6x1x128xf32> to vector<1x1x128xf32>
    %19 = vector.shape_cast %18 : vector<1x1x128xf32> to vector<1x128xf32>
    %cst_5 = arith.constant 5.000000e-02 : f32
    %20 = vector.broadcast %cst_5 : f32 to vector<1x128xf32>
    %21 = arith.mulf %19, %20 : vector<1x128xf32>
    %22 = vector.extract_strided_slice %1 {offsets = [5, 0, 0], sizes = [1, 1, 128], strides = [1, 1, 1]} : vector<6x1x128xf32> to vector<1x1x128xf32>
    %23 = vector.shape_cast %22 : vector<1x1x128xf32> to vector<1x128xf32>
    %cst_6 = arith.constant 5.000000e-02 : f32
    %24 = vector.broadcast %cst_6 : f32 to vector<1x128xf32>
    %25 = arith.mulf %23, %24 : vector<1x128xf32>
    %26 = arith.mulf %5, %5 : vector<1x128xf32>
    %27 = arith.mulf %9, %9 : vector<1x128xf32>
    %28 = arith.mulf %13, %13 : vector<1x128xf32>
    %29 = arith.mulf %5, %9 : vector<1x128xf32>
    %30 = arith.mulf %5, %13 : vector<1x128xf32>
    %31 = arith.mulf %9, %13 : vector<1x128xf32>
    %32 = arith.addf %26, %27 : vector<1x128xf32>
    %33 = arith.addf %32, %28 : vector<1x128xf32>
    %34 = arith.mulf %33, %33 : vector<1x128xf32>
    %cst_7 = arith.constant 0.166666672 : f32
    %35 = vector.broadcast %cst_7 : f32 to vector<1x128xf32>
    %36 = arith.mulf %33, %35 : vector<1x128xf32>
    %cst_8 = arith.constant 1.000000e+00 : f32
    %37 = vector.broadcast %cst_8 : f32 to vector<1x128xf32>
    %38 = arith.subf %37, %36 : vector<1x128xf32>
    %cst_9 = arith.constant 0.00833333377 : f32
    %39 = vector.broadcast %cst_9 : f32 to vector<1x128xf32>
    %40 = arith.mulf %34, %39 : vector<1x128xf32>
    %41 = arith.addf %38, %40 : vector<1x128xf32>
    %cst_10 = arith.constant 0.0416666679 : f32
    %42 = vector.broadcast %cst_10 : f32 to vector<1x128xf32>
    %43 = arith.mulf %33, %42 : vector<1x128xf32>
    %cst_11 = arith.constant 5.000000e-01 : f32
    %44 = vector.broadcast %cst_11 : f32 to vector<1x128xf32>
    %45 = arith.subf %44, %43 : vector<1x128xf32>
    %cst_12 = arith.constant 0.00138888892 : f32
    %46 = vector.broadcast %cst_12 : f32 to vector<1x128xf32>
    %47 = arith.mulf %34, %46 : vector<1x128xf32>
    %48 = arith.addf %45, %47 : vector<1x128xf32>
    %49 = arith.mulf %41, %5 : vector<1x128xf32>
    %50 = arith.mulf %41, %9 : vector<1x128xf32>
    %51 = arith.mulf %41, %13 : vector<1x128xf32>
    %52 = arith.mulf %48, %29 : vector<1x128xf32>
    %53 = arith.mulf %48, %30 : vector<1x128xf32>
    %54 = arith.mulf %48, %31 : vector<1x128xf32>
    %55 = arith.addf %27, %28 : vector<1x128xf32>
    %56 = arith.mulf %48, %55 : vector<1x128xf32>
    %cst_13 = arith.constant 1.000000e+00 : f32
    %57 = vector.broadcast %cst_13 : f32 to vector<1x128xf32>
    %58 = arith.subf %57, %56 : vector<1x128xf32>
    %c0_14 = arith.constant 0 : index
    %c0_15 = arith.constant 0 : index
    %c0_16 = arith.constant 0 : index
    %59 = vector.load %arg2[%c0_14, %c0_15, %c0_16] : memref<12x1x128xf32, #tpu.memory_space<vmem>>, vector<1x1x128xf32>
    %60 = vector.shape_cast %59 : vector<1x1x128xf32> to vector<1x128xf32>
    %61 = vector.shape_cast %58 : vector<1x128xf32> to vector<1x1x128xf32>
    tpu.vector_store %arg2[%c0_14, %c0_15, %c0_16], %61 {strides = array<i32>} : memref<12x1x128xf32, #tpu.memory_space<vmem>>, vector<1x1x128xf32>,
    %62 = arith.subf %52, %51 : vector<1x128xf32>
    %c1 = arith.constant 1 : index
    %c0_17 = arith.constant 0 : index
    %c0_18 = arith.constant 0 : index
    %63 = vector.load %arg2[%c1, %c0_17, %c0_18] : memref<12x1x128xf32, #tpu.memory_space<vmem>>, vector<1x1x128xf32>
    %64 = vector.shape_cast %63 : vector<1x1x128xf32> to vector<1x128xf32>
    %65 = vector.shape_cast %62 : vector<1x128xf32> to vector<1x1x128xf32>
    tpu.vector_store %arg2[%c1, %c0_17, %c0_18], %65 {strides = array<i32>} : memref<12x1x128xf32, #tpu.memory_space<vmem>>, vector<1x1x128xf32>,
    %66 = arith.addf %53, %50 : vector<1x128xf32>
    %c2 = arith.constant 2 : index
    %c0_19 = arith.constant 0 : index
    %c0_20 = arith.constant 0 : index
    %67 = vector.load %arg2[%c2, %c0_19, %c0_20] : memref<12x1x128xf32, #tpu.memory_space<vmem>>, vector<1x1x128xf32>
    %68 = vector.shape_cast %67 : vector<1x1x128xf32> to vector<1x128xf32>
    %69 = vector.shape_cast %66 : vector<1x128xf32> to vector<1x1x128xf32>
    tpu.vector_store %arg2[%c2, %c0_19, %c0_20], %69 {strides = array<i32>} : memref<12x1x128xf32, #tpu.memory_space<vmem>>, vector<1x1x128xf32>,
    %c3 = arith.constant 3 : index
    %c0_21 = arith.constant 0 : index
    %c0_22 = arith.constant 0 : index
    %70 = vector.load %arg2[%c3, %c0_21, %c0_22] : memref<12x1x128xf32, #tpu.memory_space<vmem>>, vector<1x1x128xf32>
    %71 = vector.shape_cast %70 : vector<1x1x128xf32> to vector<1x128xf32>
    %72 = vector.shape_cast %17 : vector<1x128xf32> to vector<1x1x128xf32>
    tpu.vector_store %arg2[%c3, %c0_21, %c0_22], %72 {strides = array<i32>} : memref<12x1x128xf32, #tpu.memory_space<vmem>>, vector<1x1x128xf32>,
    %73 = arith.addf %52, %51 : vector<1x128xf32>
    %c4 = arith.constant 4 : index
    %c0_23 = arith.constant 0 : index
    %c0_24 = arith.constant 0 : index
    %74 = vector.load %arg2[%c4, %c0_23, %c0_24] : memref<12x1x128xf32, #tpu.memory_space<vmem>>, vector<1x1x128xf32>
    %75 = vector.shape_cast %74 : vector<1x1x128xf32> to vector<1x128xf32>
    %76 = vector.shape_cast %73 : vector<1x128xf32> to vector<1x1x128xf32>
    tpu.vector_store %arg2[%c4, %c0_23, %c0_24], %76 {strides = array<i32>} : memref<12x1x128xf32, #tpu.memory_space<vmem>>, vector<1x1x128xf32>,
    %77 = arith.addf %26, %28 : vector<1x128xf32>
    %78 = arith.mulf %48, %77 : vector<1x128xf32>
    %cst_25 = arith.constant 1.000000e+00 : f32
    %79 = vector.broadcast %cst_25 : f32 to vector<1x128xf32>
    %80 = arith.subf %79, %78 : vector<1x128xf32>
    %c5 = arith.constant 5 : index
    %c0_26 = arith.constant 0 : index
    %c0_27 = arith.constant 0 : index
    %81 = vector.load %arg2[%c5, %c0_26, %c0_27] : memref<12x1x128xf32, #tpu.memory_space<vmem>>, vector<1x1x128xf32>
    %82 = vector.shape_cast %81 : vector<1x1x128xf32> to vector<1x128xf32>
    %83 = vector.shape_cast %80 : vector<1x128xf32> to vector<1x1x128xf32>
    tpu.vector_store %arg2[%c5, %c0_26, %c0_27], %83 {strides = array<i32>} : memref<12x1x128xf32, #tpu.memory_space<vmem>>, vector<1x1x128xf32>,
    %84 = arith.subf %54, %49 : vector<1x128xf32>
    %c6 = arith.constant 6 : index
    %c0_28 = arith.constant 0 : index
    %c0_29 = arith.constant 0 : index
    %85 = vector.load %arg2[%c6, %c0_28, %c0_29] : memref<12x1x128xf32, #tpu.memory_space<vmem>>, vector<1x1x128xf32>
    %86 = vector.shape_cast %85 : vector<1x1x128xf32> to vector<1x128xf32>
    %87 = vector.shape_cast %84 : vector<1x128xf32> to vector<1x1x128xf32>
    tpu.vector_store %arg2[%c6, %c0_28, %c0_29], %87 {strides = array<i32>} : memref<12x1x128xf32, #tpu.memory_space<vmem>>, vector<1x1x128xf32>,
    %c7 = arith.constant 7 : index
    %c0_30 = arith.constant 0 : index
    %c0_31 = arith.constant 0 : index
    %88 = vector.load %arg2[%c7, %c0_30, %c0_31] : memref<12x1x128xf32, #tpu.memory_space<vmem>>, vector<1x1x128xf32>
    %89 = vector.shape_cast %88 : vector<1x1x128xf32> to vector<1x128xf32>
    %90 = vector.shape_cast %21 : vector<1x128xf32> to vector<1x1x128xf32>
    tpu.vector_store %arg2[%c7, %c0_30, %c0_31], %90 {strides = array<i32>} : memref<12x1x128xf32, #tpu.memory_space<vmem>>, vector<1x1x128xf32>,
    %91 = arith.subf %53, %50 : vector<1x128xf32>
    %c8 = arith.constant 8 : index
    %c0_32 = arith.constant 0 : index
    %c0_33 = arith.constant 0 : index
    %92 = vector.load %arg2[%c8, %c0_32, %c0_33] : memref<12x1x128xf32, #tpu.memory_space<vmem>>, vector<1x1x128xf32>
    %93 = vector.shape_cast %92 : vector<1x1x128xf32> to vector<1x128xf32>
    %94 = vector.shape_cast %91 : vector<1x128xf32> to vector<1x1x128xf32>
    tpu.vector_store %arg2[%c8, %c0_32, %c0_33], %94 {strides = array<i32>} : memref<12x1x128xf32, #tpu.memory_space<vmem>>, vector<1x1x128xf32>,
    %95 = arith.addf %54, %49 : vector<1x128xf32>
    %c9 = arith.constant 9 : index
    %c0_34 = arith.constant 0 : index
    %c0_35 = arith.constant 0 : index
    %96 = vector.load %arg2[%c9, %c0_34, %c0_35] : memref<12x1x128xf32, #tpu.memory_space<vmem>>, vector<1x1x128xf32>
    %97 = vector.shape_cast %96 : vector<1x1x128xf32> to vector<1x128xf32>
    %98 = vector.shape_cast %95 : vector<1x128xf32> to vector<1x1x128xf32>
    tpu.vector_store %arg2[%c9, %c0_34, %c0_35], %98 {strides = array<i32>} : memref<12x1x128xf32, #tpu.memory_space<vmem>>, vector<1x1x128xf32>,
    %99 = arith.addf %26, %27 : vector<1x128xf32>
    %100 = arith.mulf %48, %99 : vector<1x128xf32>
    %cst_36 = arith.constant 1.000000e+00 : f32
    %101 = vector.broadcast %cst_36 : f32 to vector<1x128xf32>
    %102 = arith.subf %101, %100 : vector<1x128xf32>
    %c10 = arith.constant 10 : index
    %c0_37 = arith.constant 0 : index
    %c0_38 = arith.constant 0 : index
    %103 = vector.load %arg2[%c10, %c0_37, %c0_38] : memref<12x1x128xf32, #tpu.memory_space<vmem>>, vector<1x1x128xf32>
    %104 = vector.shape_cast %103 : vector<1x1x128xf32> to vector<1x128xf32>
    %105 = vector.shape_cast %102 : vector<1x128xf32> to vector<1x1x128xf32>
    tpu.vector_store %arg2[%c10, %c0_37, %c0_38], %105 {strides = array<i32>} : memref<12x1x128xf32, #tpu.memory_space<vmem>>, vector<1x1x128xf32>,
    %c11 = arith.constant 11 : index
    %c0_39 = arith.constant 0 : index
    %c0_40 = arith.constant 0 : index
    %106 = vector.load %arg2[%c11, %c0_39, %c0_40] : memref<12x1x128xf32, #tpu.memory_space<vmem>>, vector<1x1x128xf32>
    %107 = vector.shape_cast %106 : vector<1x1x128xf32> to vector<1x128xf32>
    %108 = vector.shape_cast %25 : vector<1x128xf32> to vector<1x1x128xf32>
    tpu.vector_store %arg2[%c11, %c0_39, %c0_40], %108 {strides = array<i32>} : memref<12x1x128xf32, #tpu.memory_space<vmem>>, vector<1x1x128xf32>,
    return
  }
  func.func @transform_0(%arg0: i32) -> (i32, i32, i32) {
    %c0_i32 = arith.constant 0 : i32
    %c0_i32_0 = arith.constant 0 : i32
    %c0_i32_1 = arith.constant 0 : i32
    return %c0_i32, %arg0, %c0_i32_0 : i32, i32, i32
  }
  func.func @transform_1(%arg0: i32) -> (i32, i32, i32) {
    %c0_i32 = arith.constant 0 : i32
    %c0_i32_0 = arith.constant 0 : i32
    %c0_i32_1 = arith.constant 0 : i32
    return %c0_i32, %arg0, %c0_i32_0 : i32, i32, i32
  }
}

</mosaic_0001>

<bundles_post_ra>
// kernel: tpu_custom_call.1
= control target key start
LH: loop header
LB: loop body
LE: loop exit
PB: predicated region body
PF: predicated region fallthrough
CT: control target
= control target key end

     0   :  { %6 = vsyncpa [#allocation3], 0  ;;  %s216_s0 = inlined_call_operand.hbm [shape: f32[6,1,128], index: 0, kind: input, shape index: {}]   ;;  %s217_s1 = inlined_call_operand.hbm [shape: f32[12,1,128], index: 1, kind: output, shape index: {}]  }
   0x1   :  { %7 = vsyncpa [#allocation4], 0  ;;  %s12_s8 = sshll.u32 %s216_s0, 4  ;;  %s190_s9 = smov [#allocation2]   ;;  %s13_s8 = int_to_ptr.hbm [resolvable:$true] %s12_s8 }
   0x2   :  { %s14_s10 = sshll.u32 %s190_s9, 4  ;;  %s191_s11 = smov 16   ;;  %s15_s10 = int_to_ptr.vmem [resolvable:$true] %s14_s10 }
   0x3   :  { %s192_s12 = smov 1  }
   0x4   :  { %20 = dma.hbm_to_vmem [thread:$0]  %s13_s8, 96, %s15_s10, [#allocation3], %s191_s11, %s191_s11, %s192_s12  }
   0x5   :  { %186 = dma.done.wait [#allocation3], 96  }
   0x6   :  { %187 = vsyncadd [#allocation3], 4294967200  ;;  %v25_v0 = vld [vmem:[#allocation2] sm:$0x1]  ;;  %v26_v1 = vld [vmem:[#allocation2 + $0x1] sm:$0x1] }
   0x7   :  { %v27_v2 = vld [vmem:[#allocation2 + $0x2] sm:$0x1]  ;;  %126 = vtanh.f32 %v25_v0  ;;  %v28_v3 = vld [vmem:[#allocation2 + $0x3] sm:$0x1]  ;;  %v29_v4 = vld [vmem:[#allocation2 + $0x4] sm:$0x1] }
   0x8   :  { %128 = vtanh.f32 %v26_v1  ;;  %v30_v5 = vld [vmem:[#allocation2 + $0x5] sm:$0x1]  ;;  %s193_s0 = smov [#allocation5]   ;;  %s109_s16 = sshll.u32 %s217_s1, 4  ;;  %s110_s16 = int_to_ptr.hbm [resolvable:$true] %s109_s16 }
   0x9   :  { %130 = vtanh.f32 %v27_v2  ;;  %s107_s13 = sshll.u32 %s193_s0, 4  ;;  %s108_s13 = int_to_ptr.vmem [resolvable:$true] %s107_s13 }
   0xa   :  { %132 = vtanh.f32 %v28_v3 }
   0xb   :  { %134 = vtanh.f32 %v29_v4 }
   0xc   :  { %136 = vtanh.f32 %v30_v5 }
   0xd   :  { %v127_v6 = vpop.eup %126 }
   0xe   :  { %v129_v7 = vpop.eup %128  ;;  %v37_v8 = vmul.f32 0.0034906585, %v127_v6 }
   0xf   :  { %v131_v9 = vpop.eup %130  ;;  %v38_v10 = vmul.f32 0.0034906585, %v129_v7 }
  0x10   :  { %v133_v11 = vpop.eup %132  ;;  %v39_v12 = vmul.f32 0.0034906585, %v131_v9  ;;  %v43_v13 = vmul.f32 %v37_v8, %v37_v8 }
  0x11   :  { %v135_v14 = vpop.eup %134  ;;  %v44_v15 = vmul.f32 %v38_v10, %v38_v10  ;;  %v40_v16 = vmul.f32 0.05, %v133_v11  ;;  %v46_v27 = vmul.f32 %v38_v10, %v37_v8 }
  0x12   :  { %v137_v17 = vpop.eup %136  ;;  %v45_v18 = vmul.f32 %v39_v12, %v39_v12  ;;  %v41_v19 = vmul.f32 0.05, %v135_v14  ;;  %v47_v32 = vmul.f32 %v39_v12, %v37_v8  ;;  %v48_v34 = vmul.f32 %v39_v12, %v38_v10 }
  0x13   :  { %v49_v20 = vadd.f32 %v44_v15, %v43_v13  ;;  %77 = vst [vmem:[#allocation5 + $0x3] sm:$0x1] %v40_v16  ;;  %v42_v21 = vmul.f32 0.05, %v137_v17 }
  0x14   :  { %90 = vst [vmem:[#allocation5 + $0x7] sm:$0x1] %v41_v19  ;;  %v66_v26 = vadd.f32 %v45_v18, %v44_v15  ;;  %v81_v33 = vadd.f32 %v45_v18, %v43_v13 }
  0x15   :  { %v50_v22 = vadd.f32 %v49_v20, %v45_v18  ;;  %102 = vst [vmem:[#allocation5 + $0xb] sm:$0x1] %v42_v21 }
  0x17   :  { %v51_v23 = vmul.f32 %v50_v22, %v50_v22  ;;  %v56_v24 = vmul.f32 0.041666668, %v50_v22  ;;  %v52_v25 = vmul.f32 0.16666667, %v50_v22 }
  0x19   :  { %v57_v28 = vsub.f32 0.5, %v56_v24  ;;  %v58_v29 = vmul.f32 0.0013888889, %v51_v23  ;;  %v53_v30 = vsub.f32 1.0, %v52_v25  ;;  %v54_v31 = vmul.f32 0.008333334, %v51_v23 }
  0x1b   :  { %v59_v35 = vadd.f32 %v58_v29, %v57_v28  ;;  %v55_v36 = vadd.f32 %v54_v31, %v53_v30 }
  0x1d   :  { %v67_v37 = vmul.f32 %v66_v26, %v59_v35  ;;  %v62_v38 = vmul.f32 %v55_v36, %v39_v12  ;;  %v63_v39 = vmul.f32 %v59_v35, %v46_v27  ;;  %v61_v40 = vmul.f32 %v55_v36, %v38_v10 }
  0x1e   :  { %v64_v41 = vmul.f32 %v59_v35, %v47_v32  ;;  %v82_v42 = vmul.f32 %v81_v33, %v59_v35  ;;  %v60_v43 = vmul.f32 %v55_v36, %v37_v8  ;;  %v65_v44 = vmul.f32 %v59_v35, %v48_v34 }
  0x1f   :  { %v68_v45 = vsub.f32 1.0, %v67_v37  ;;  %v70_v46 = vsub.f32 %v63_v39, %v62_v38  ;;  %v78_v48 = vadd.f32 %v63_v39, %v62_v38  ;;  %v97_v50 = vmul.f32 %v59_v35, %v49_v20 }
  0x20   :  { %v73_v47 = vadd.f32 %v64_v41, %v61_v40  ;;  %v83_v49 = vsub.f32 1.0, %v82_v42  ;;  %v86_v51 = vsub.f32 %v65_v44, %v60_v43  ;;  %v91_v52 = vsub.f32 %v64_v41, %v61_v40 }
  0x21   :  { %69 = vst [vmem:[#allocation5] sm:$0x1] %v68_v45  ;;  %v94_v53 = vadd.f32 %v65_v44, %v60_v43  ;;  %v98_v54 = vsub.f32 1.0, %v97_v50 }
  0x22   :  { %72 = vst [vmem:[#allocation5 + $0x1] sm:$0x1] %v70_v46 }
  0x23   :  { %75 = vst [vmem:[#allocation5 + $0x2] sm:$0x1] %v73_v47 }
  0x24   :  { %80 = vst [vmem:[#allocation5 + $0x4] sm:$0x1] %v78_v48 }
  0x25   :  { %85 = vst [vmem:[#allocation5 + $0x5] sm:$0x1] %v83_v49 }
  0x26   :  { %88 = vst [vmem:[#allocation5 + $0x6] sm:$0x1] %v86_v51 }
  0x27   :  { %93 = vst [vmem:[#allocation5 + $0x8] sm:$0x1] %v91_v52 }
  0x28   :  { %96 = vst [vmem:[#allocation5 + $0x9] sm:$0x1] %v94_v53 }
  0x29   :  { %100 = vst [vmem:[#allocation5 + $0xa] sm:$0x1] %v98_v54 }
  0x2a   :  { %115 = dma.vmem_to_hbm [thread:$0]  %s108_s13, 192, %s110_s16, [#allocation4], %s191_s11, %s191_s11, %s192_s12  }
  0x2b   :  { %188 = dma.done.wait [#allocation4], 192  }
  0x2c   :  { %189 = vsyncadd [#allocation4], 4294967104 }
  0x2d   :  { %120 = vsyncpa [#allocation3], 1 }
  0x2e   :  { %121 = vsyncpa [#allocation4], 1 }

</bundles_post_ra>
